<compile_context>
chip_gen: v7x
topology: tpu7x:2x2x1
jax: 0.10.0
libtpu: 0.0.40
codegen_flags: <defaults>
</compile_context>

<pallas_src>
import functools

import jax
import jax.numpy as jnp
from jax.experimental import pallas as pl
from jax.experimental.pallas import tpu as pltpu

LANE = 128
SUBLANE = 8


def _round_up(x, m):
    return ((x + m - 1) // m) * m


def policy_mlp_kernel(x_ref, w1_ref, b1_ref, w2_ref, b2_ref, w3_ref, b3_ref,
                      o_ref):
    """Fused 3-layer MLP on one (tile_m, input_dims) batch tile.

    Weights/biases are VMEM-resident blocks (constant index_map, fetched once).
    Matmuls run on the MXU with bf16 operands and f32 accumulation; bias-add
    and ReLU run in f32 on the VPU.  o_ref is (tile_m, n_actions): only the
    real logit columns go back to HBM.
    """
    x = x_ref[...].astype(jnp.bfloat16)

    h1 = jnp.dot(x, w1_ref[...], preferred_element_type=jnp.float32)
    h1 = jnp.maximum(h1 + b1_ref[...], 0.0)

    h2 = jnp.dot(h1.astype(jnp.bfloat16), w2_ref[...],
                 preferred_element_type=jnp.float32)
    h2 = jnp.maximum(h2 + b2_ref[...], 0.0)

    # fc3 computed lane-dense (w3 padded to 128 output lanes at pack time);
    # only the first n_actions columns are biased and stored.
    out = jnp.dot(h2.astype(jnp.bfloat16), w3_ref[...],
                  preferred_element_type=jnp.float32)
    n_out = o_ref.shape[-1]
    o_ref[...] = (out[:, :n_out] + b3_ref[...]).astype(o_ref.dtype)


@functools.partial(jax.jit, static_argnames=("tm",))
def policy_forward(state, kparams, *, tm=2048):
    """state: [batch, input_dims] float32; kparams: packed params (see pack_params).

    Returns logits of shape [batch, n_actions] (float32).
    """
    w1, b1 = kparams["w1"], kparams["b1"]
    w2, b2 = kparams["w2"], kparams["b2"]
    w3p, b3 = kparams["w3p"], kparams["b3"]
    batch, input_dims = state.shape
    hidden = w1.shape[1]
    n_actions = b3.shape[1]
    n_pad = w3p.shape[1]

    # Batch tile: multiple of 8 sublanes, big enough to amortize the ~0.35us
    # per-grid-step overhead, but capped so the grid has >=2 steps whenever the
    # batch allows (v7x has 2 TCs sharing the "parallel" grid axis).
    if batch <= SUBLANE:
        tile_m = SUBLANE
    else:
        tile_m = min(_round_up(tm, SUBLANE),
                     _round_up(pl.cdiv(batch, 2), SUBLANE))
    grid = (pl.cdiv(batch, tile_m),)  # ragged last block is clipped by Pallas

    x_spec = pl.BlockSpec((tile_m, input_dims), lambda i: (i, 0))
    out_spec = pl.BlockSpec((tile_m, n_actions), lambda i: (i, 0))

    def const_spec(arr):
        # Full-array block, constant block index -> DMA'd once and kept
        # VMEM-resident across all grid steps (~65 KB total in bf16).
        return pl.BlockSpec(arr.shape, lambda i: (0, 0))

    cost = pl.CostEstimate(
        flops=2 * batch * (input_dims * hidden + hidden * hidden
                           + hidden * n_pad),
        transcendentals=0,
        bytes_accessed=(batch * (input_dims + n_actions) * 4
                        + (w1.size + w2.size + w3p.size) * 2
                        + (b1.size + b2.size + b3.size) * 4),
    )

    return pl.pallas_call(
        policy_mlp_kernel,
        out_shape=jax.ShapeDtypeStruct((batch, n_actions), jnp.float32),
        grid=grid,
        in_specs=[
            x_spec,
            const_spec(w1), const_spec(b1),
            const_spec(w2), const_spec(b2),
            const_spec(w3p), const_spec(b3),
        ],
        out_specs=out_spec,
        compiler_params=pltpu.CompilerParams(
            dimension_semantics=("parallel",)),
        cost_estimate=cost,
    )(state, w1, b1, w2, b2, w3p, b3)


def init_params(key, input_dims, n_actions, hidden=128):
    """PyTorch nn.Linear-style init (uniform +-1/sqrt(fan_in)), f32 masters.

    Weights are stored already transposed to (in, out); biases as (1, out).
    """
    def linear(key, fan_in, fan_out):
        kw, kb = jax.random.split(key)
        bound = 1.0 / jnp.sqrt(jnp.float32(fan_in))
        w = jax.random.uniform(kw, (fan_in, fan_out), jnp.float32, -bound, bound)
        b = jax.random.uniform(kb, (1, fan_out), jnp.float32, -bound, bound)
        return w, b

    k1, k2, k3 = jax.random.split(key, 3)
    w1, b1 = linear(k1, input_dims, hidden)
    w2, b2 = linear(k2, hidden, hidden)
    w3, b3 = linear(k3, hidden, n_actions)
    return {"w1": w1, "b1": b1, "w2": w2, "b2": b2, "w3": w3, "b3": b3}


def pack_params(params):
    """One-time kernel packing: bf16 weights, fc3 weight padded to 128 lanes.

    Done once per parameter update (not per forward call), so the pad/cast
    copies never appear in the rollout hot loop.
    """
    hidden, n_actions = params["w3"].shape
    n_pad = _round_up(max(n_actions, 1), LANE)
    w3p = jnp.zeros((hidden, n_pad), jnp.bfloat16).at[:, :n_actions].set(
        params["w3"].astype(jnp.bfloat16))
    return {
        "w1": params["w1"].astype(jnp.bfloat16),
        "b1": params["b1"],
        "w2": params["w2"].astype(jnp.bfloat16),
        "b2": params["b2"],
        "w3p": w3p,
        "b3": params["b3"],
    }


def reference_forward(state, params):
    h1 = jnp.maximum(state @ params["w1"] + params["b1"], 0.0)
    h2 = jnp.maximum(h1 @ params["w2"] + params["b2"], 0.0)
    return h2 @ params["w3"] + params["b3"]


# TODO(synk): the Adam optimizer / .to(device) parts of the PyTorch module are
# training-side plumbing with no forward-pass Pallas equivalent; only forward()
# is implemented here.

if __name__ == "__main__":
    key = jax.random.PRNGKey(0)
    k_params, k_state = jax.random.split(key)

    # LunarLander-v2: observation dim 8, 4 discrete actions.  Batched rollout
    # of states exercises the 2-step ragged grid (300 rows -> tile_m=152).
    batch, input_dims, n_actions = 300, 8, 4

    params = init_params(k_params, input_dims, n_actions)
    kparams = pack_params(params)
    state = jax.random.normal(k_state, (batch, input_dims), jnp.float32)

    out = jax.block_until_ready(policy_forward(state, kparams))
    ref = reference_forward(state, params)
    assert out.shape == (batch, n_actions)
    # bf16 matmul operands (f32 accumulation) -> loose tolerance vs f32 ref.
    assert jnp.allclose(out, ref, atol=5e-2, rtol=5e-2), (
        "max abs diff: %f" % float(jnp.max(jnp.abs(out - ref))))

    # Tiny per-step case (batch < 8): single clipped block, no padding needed.
    small = state[:3]
    out_small = jax.block_until_ready(policy_forward(small, kparams))
    assert out_small.shape == (3, n_actions)
    assert jnp.allclose(out_small, reference_forward(small, params),
                        atol=5e-2, rtol=5e-2)

    print("KERNEL_OK")
</pallas_src>

<mosaic_0001>
module attributes {stable_mosaic.version = 11 : i64} {
  func.func @policy_mlp_kernel(%arg0: i32, %arg1: memref<152x8xf32, #tpu.memory_space<vmem>>, %arg2: memref<8x128xbf16, #tpu.memory_space<vmem>>, %arg3: memref<1x128xf32, #tpu.memory_space<vmem>>, %arg4: memref<128x128xbf16, #tpu.memory_space<vmem>>, %arg5: memref<1x128xf32, #tpu.memory_space<vmem>>, %arg6: memref<128x128xbf16, #tpu.memory_space<vmem>>, %arg7: memref<1x4xf32, #tpu.memory_space<vmem>>, %arg8: memref<152x4xf32, #tpu.memory_space<vmem>>) attributes {dimension_semantics = [#tpu.dimension_semantics<parallel>], iteration_bounds = array<i64: 2>, scalar_prefetch = 0 : i64, scratch_operands = 0 : i64, tpu.core_type = #tpu.core_type<tc>, window_params = [{transform_indices = @transform_0, window_bounds = array<i64: 152, 8>}, {pipeline_mode = #tpu.pipeline_mode<synchronous>, transform_indices = @transform_1, window_bounds = array<i64: 8, 128>}, {pipeline_mode = #tpu.pipeline_mode<synchronous>, transform_indices = @transform_2, window_bounds = array<i64: 1, 128>}, {pipeline_mode = #tpu.pipeline_mode<synchronous>, transform_indices = @transform_3, window_bounds = array<i64: 128, 128>}, {pipeline_mode = #tpu.pipeline_mode<synchronous>, transform_indices = @transform_4, window_bounds = array<i64: 1, 128>}, {pipeline_mode = #tpu.pipeline_mode<synchronous>, transform_indices = @transform_5, window_bounds = array<i64: 128, 128>}, {pipeline_mode = #tpu.pipeline_mode<synchronous>, transform_indices = @transform_6, window_bounds = array<i64: 1, 4>}, {transform_indices = @transform_7, window_bounds = array<i64: 152, 4>}]} {
    %c0 = arith.constant 0 : index
    %c0_0 = arith.constant 0 : index
    %0 = vector.load %arg1[%c0, %c0_0] : memref<152x8xf32, #tpu.memory_space<vmem>>, vector<152x8xf32>
    %1 = arith.truncf %0 : vector<152x8xf32> to vector<152x8xbf16>
    %c0_1 = arith.constant 0 : index
    %c0_2 = arith.constant 0 : index
    %2 = vector.load %arg2[%c0_1, %c0_2] : memref<8x128xbf16, #tpu.memory_space<vmem>>, vector<8x128xbf16>
    %cst = arith.constant dense<0.000000e+00> : vector<152x128xf32>
    %3 = tpu.matmul %1, %2, %cst {dimension_numbers = #tpu.dot_dimension_numbers<[1], [0], [0], [1], [0, 0, 1, 1], [], []>} : vector<152x8xbf16>, vector<8x128xbf16>, vector<152x128xf32> -> vector<152x128xf32>
    %c0_3 = arith.constant 0 : index
    %c0_4 = arith.constant 0 : index
    %4 = vector.load %arg3[%c0_3, %c0_4] : memref<1x128xf32, #tpu.memory_space<vmem>>, vector<1x128xf32>
    %5 = vector.broadcast %4 : vector<1x128xf32> to vector<152x128xf32>
    %6 = arith.addf %3, %5 : vector<152x128xf32>
    %cst_5 = arith.constant 0.000000e+00 : f32
    %7 = vector.broadcast %cst_5 : f32 to vector<152x128xf32>
    %8 = arith.maximumf %6, %7 : vector<152x128xf32>
    %9 = arith.truncf %8 : vector<152x128xf32> to vector<152x128xbf16>
    %c0_6 = arith.constant 0 : index
    %c0_7 = arith.constant 0 : index
    %10 = vector.load %arg4[%c0_6, %c0_7] : memref<128x128xbf16, #tpu.memory_space<vmem>>, vector<128x128xbf16>
    %cst_8 = arith.constant dense<0.000000e+00> : vector<152x128xf32>
    %11 = tpu.matmul %9, %10, %cst_8 {dimension_numbers = #tpu.dot_dimension_numbers<[1], [0], [0], [1], [0, 0, 1, 1], [], []>} : vector<152x128xbf16>, vector<128x128xbf16>, vector<152x128xf32> -> vector<152x128xf32>
    %c0_9 = arith.constant 0 : index
    %c0_10 = arith.constant 0 : index
    %12 = vector.load %arg5[%c0_9, %c0_10] : memref<1x128xf32, #tpu.memory_space<vmem>>, vector<1x128xf32>
    %13 = vector.broadcast %12 : vector<1x128xf32> to vector<152x128xf32>
    %14 = arith.addf %11, %13 : vector<152x128xf32>
    %cst_11 = arith.constant 0.000000e+00 : f32
    %15 = vector.broadcast %cst_11 : f32 to vector<152x128xf32>
    %16 = arith.maximumf %14, %15 : vector<152x128xf32>
    %17 = arith.truncf %16 : vector<152x128xf32> to vector<152x128xbf16>
    %c0_12 = arith.constant 0 : index
    %c0_13 = arith.constant 0 : index
    %18 = vector.load %arg6[%c0_12, %c0_13] : memref<128x128xbf16, #tpu.memory_space<vmem>>, vector<128x128xbf16>
    %cst_14 = arith.constant dense<0.000000e+00> : vector<152x128xf32>
    %19 = tpu.matmul %17, %18, %cst_14 {dimension_numbers = #tpu.dot_dimension_numbers<[1], [0], [0], [1], [0, 0, 1, 1], [], []>} : vector<152x128xbf16>, vector<128x128xbf16>, vector<152x128xf32> -> vector<152x128xf32>
    %20 = vector.extract_strided_slice %19 {offsets = [0, 0], sizes = [152, 4], strides = [1, 1]} : vector<152x128xf32> to vector<152x4xf32>
    %c0_15 = arith.constant 0 : index
    %c0_16 = arith.constant 0 : index
    %21 = vector.load %arg7[%c0_15, %c0_16] : memref<1x4xf32, #tpu.memory_space<vmem>>, vector<1x4xf32>
    %22 = vector.broadcast %21 : vector<1x4xf32> to vector<152x4xf32>
    %23 = arith.addf %20, %22 : vector<152x4xf32>
    %c0_17 = arith.constant 0 : index
    %c0_18 = arith.constant 0 : index
    %24 = vector.load %arg8[%c0_17, %c0_18] : memref<152x4xf32, #tpu.memory_space<vmem>>, vector<152x4xf32>
    tpu.vector_store %arg8[%c0_17, %c0_18], %23 {strides = array<i32>} : memref<152x4xf32, #tpu.memory_space<vmem>>, vector<152x4xf32>,
    return
  }
  func.func @transform_0(%arg0: i32) -> (i32, i32) {
    %c0_i32 = arith.constant 0 : i32
    %c0_i32_0 = arith.constant 0 : i32
    return %arg0, %c0_i32 : i32, i32
  }
  func.func @transform_1(%arg0: i32) -> (i32, i32) {
    %c0_i32 = arith.constant 0 : i32
    %c0_i32_0 = arith.constant 0 : i32
    %c0_i32_1 = arith.constant 0 : i32
    return %c0_i32, %c0_i32_0 : i32, i32
  }
  func.func @transform_2(%arg0: i32) -> (i32, i32) {
    %c0_i32 = arith.constant 0 : i32
    %c0_i32_0 = arith.constant 0 : i32
    %c0_i32_1 = arith.constant 0 : i32
    return %c0_i32, %c0_i32_0 : i32, i32
  }
  func.func @transform_3(%arg0: i32) -> (i32, i32) {
    %c0_i32 = arith.constant 0 : i32
    %c0_i32_0 = arith.constant 0 : i32
    %c0_i32_1 = arith.constant 0 : i32
    return %c0_i32, %c0_i32_0 : i32, i32
  }
  func.func @transform_4(%arg0: i32) -> (i32, i32) {
    %c0_i32 = arith.constant 0 : i32
    %c0_i32_0 = arith.constant 0 : i32
    %c0_i32_1 = arith.constant 0 : i32
    return %c0_i32, %c0_i32_0 : i32, i32
  }
  func.func @transform_5(%arg0: i32) -> (i32, i32) {
    %c0_i32 = arith.constant 0 : i32
    %c0_i32_0 = arith.constant 0 : i32
    %c0_i32_1 = arith.constant 0 : i32
    return %c0_i32, %c0_i32_0 : i32, i32
  }
  func.func @transform_6(%arg0: i32) -> (i32, i32) {
    %c0_i32 = arith.constant 0 : i32
    %c0_i32_0 = arith.constant 0 : i32
    %c0_i32_1 = arith.constant 0 : i32
    return %c0_i32, %c0_i32_0 : i32, i32
  }
  func.func @transform_7(%arg0: i32) -> (i32, i32) {
    %c0_i32 = arith.constant 0 : i32
    %c0_i32_0 = arith.constant 0 : i32
    return %arg0, %c0_i32 : i32, i32
  }
}

</mosaic_0001>

<bundles_post_ra>
// kernel: policy_forward.1
= control target key start
LH: loop header
LB: loop body
LE: loop exit
PB: predicated region body
PF: predicated region fallthrough
CT: control target
= control target key end

     0   :  { %s1241_s24 = smov 0   ;;  %s1438_s0 = inlined_call_operand.vmem [shape: f32[300,8], index: 0, kind: input, shape index: {}]   ;;  %s1439_s1 = inlined_call_operand.vmem [shape: bf16[8,128], index: 1, kind: input, shape index: {}]   ;;  %s1440_s2 = inlined_call_operand.vmem [shape: f32[1,128], index: 2, kind: input, shape index: {}]   ;;  %s1441_s3 = inlined_call_operand.vmem [shape: bf16[128,128], index: 3, kind: input, shape index: {}]   ;;  %s1442_s4 = inlined_call_operand.vmem [shape: f32[1,128], index: 4, kind: input, shape index: {}]   ;;  %s1443_s5 = inlined_call_operand.vmem [shape: bf16[128,128], index: 5, kind: input, shape index: {}]   ;;  %s1444_s6 = inlined_call_operand.vmem [shape: f32[1,4], index: 6, kind: input, shape index: {}]   ;;  %s1445_s7 = inlined_call_operand.vmem [shape: f32[300,4], index: 7, kind: output, shape index: {}]  }
   0x1 LB: > { %s986_s25 = sadd.s32 4294967295, %s1199_s24   ;;  %p990_p0 = scmp.ge.s32.totalorder %s1199_s24, 1  ;;  %s1199_s24 = sphi %s1241_s24, %s17_s24  }
   0x2   : > { %p238_p1 = scmp.lt.s32.totalorder %s1199_s24, 3 }
   0x4   : > { %p239_p2 = pnand %p990_p0, %p238_p1 }
   0x5   : > { %v312_v0 = vld [vmem:[%s1439_s1] sm:$0xf] (!%p239_p2)  ;;  %vm351_vm0 = vcmask (!%p239_p2), 1043456   ;;  %s270_s28 = smul.u32 (!%p239_p2), 19, %s986_s25  ;;  %vm320_vm1 = vcmask (!%p239_p2), 64512   ;;  %v1178_v18 = vld [vmem:[%s1441_s3 + $0x8] sm:$0xff] (!%p239_p2)  }
   0x6   : > { %242 = sbr.rel (%p239_p2) target bundleno = 714 (0x2ca), region = 48  ;;  %v1177_v1 = vld [vmem:[%s1441_s3] sm:$0xff] (!%p239_p2)   ;;  %1167 = vmatprep.subr.msk.bf16.mxu0 (!%p239_p2), %vm351_vm0, %v312_v0  ;;  %v353_v2 = vsel (!%p239_p2), %vm351_vm0, %v312_v0, 0  ;;  %1168 = vmatprep.subr.msk.bf16.mxu1 (!%p239_p2), %vm351_vm0, %v312_v0  ;;  %v1179_v24 = vld [vmem:[%s1441_s3 + $0x10] sm:$0xff] (!%p239_p2)   ;;  %v1180_v29 = vld [vmem:[%s1441_s3 + $0x18] sm:$0xff] (!%p239_p2)   ;;  %vm910_vm2 = vcmask (!%p239_p2), 31744  }
   0x7   : > { %1072 = vmatpush3.bf16.msra.mxu0 (!%p239_p2), %v353_v2  ;;  %p271_p3 = scmp.lt.s32.totalorder (!%p239_p2), %s270_s28, 37  ;;  %1166 = vmatpush3.bf16.msra.mxu1 (!%p239_p2), %v353_v2  ;;  %v1181_v32 = vld [vmem:[%s1441_s3 + $0x20] sm:$0xff] (!%p239_p2)   ;;  %v1182_v35 = vld [vmem:[%s1441_s3 + $0x28] sm:$0xff] (!%p239_p2)   ;;  %v1183_v37 = vld [vmem:[%s1441_s3 + $0x30] sm:$0xff] (!%p239_p2)  }
   0x8   : > { %1093 = vmatprep.subr.bf16.mxu1 (!%p239_p2), %v1177_v1  ;;  %v1184_v38 = vld [vmem:[%s1441_s3 + $0x38] sm:$0xff] (!%p239_p2)   ;;  %v1185_v39 = vld [vmem:[%s1443_s5] sm:$0xff] (!%p239_p2)   ;;  %v1186_v40 = vld [vmem:[%s1443_s5 + $0x8] sm:$0xff] (!%p239_p2)  }
   0x9   : > { %1129 = vmatprep.subr.bf16.mxu0 (!%p239_p2), %v1185_v39  ;;  %v1187_v41 = vld [vmem:[%s1443_s5 + $0x10] sm:$0xff] (!%p239_p2)   ;;  %v1188_v42 = vld [vmem:[%s1443_s5 + $0x18] sm:$0xff] (!%p239_p2)   ;;  %v1189_v43 = vld [vmem:[%s1443_s5 + $0x20] sm:$0xff] (!%p239_p2)  }
   0xa   : > { %v1190_v44 = vld [vmem:[%s1443_s5 + $0x28] sm:$0xff] (!%p239_p2)   ;;  %v1336_v45 = vld [vmem:[%s1440_s2] ss:$0 sm:$0xff] (!%p239_p2) }
   0xd   : > { %s1447_s28 = smov (!%p271_p3, %s270_s28), 37 }
   0xe   : > { %s991_s8 = sshll.u32 %s1447_s28, 3 }
   0xf   : > { %s1263_s11 = scalar_lea.vmem %s1438_s0, %s991_s8  ;;  %s1395_s10 = scalar_lea.vmem %s1445_s7, %s991_s8 }
  0x10   : > { %v283_v3 = vld [vmem:[%s1263_s11] sm:$0xff]  ;;  %v284_v4 = vld [vmem:[%s1263_s11 + $0x8] sm:$0xff]  ;;  %v285_v5 = vld [vmem:[%s1263_s11 + $0x10] sm:$0xff] }
  0x11   : > { %v302_v6 = vpack.c.bf16 %v284_v4, %v283_v3  ;;  %v286_v7 = vld [vmem:[%s1263_s11 + $0x18] sm:$0xff]  ;;  %v287_v8 = vld [vmem:[%s1263_s11 + $0x20] sm:$0xff]  ;;  %v288_v9 = vld [vmem:[%s1263_s11 + $0x28] sm:$0xff] }
  0x12   : > { %v303_v10 = vpack.c.bf16 %v286_v7, %v285_v5  ;;  %v304_v11 = vpack.c.bf16 %v288_v9, %v287_v8  ;;  %v289_v12 = vld [vmem:[%s1263_s11 + $0x30] sm:$0xff]  ;;  %v290_v13 = vld [vmem:[%s1263_s11 + $0x38] sm:$0xff]  ;;  %v291_v14 = vld [vmem:[%s1263_s11 + $0x40] sm:$0xff] }
  0x13   : > { %1073 = vmatprep.mubr.msk.bf16.mxu0 %vm320_vm1, %v302_v6  ;;  %v292_v15 = vld [vmem:[%s1263_s11 + $0x48] sm:$0xff]  ;;  %v299_v16 = vld [vmem:[%s1263_s11 + $0x80] sm:$0xff]  ;;  %v301_v20 = vld [vmem:[%s1263_s11 + $0x90] sm:$0xff]  ;;  %v305_v22 = vpack.c.bf16 %v290_v13, %v289_v12 }
  0x14   : > { %1074 = vmatmul.mubr.msk.bf16.vlgmr.msra.gmra.mrb[0].mxu0 %vm320_vm1, %v303_v10  ;;  %v300_v17 = vld [vmem:[%s1263_s11 + $0x88] sm:$0xff]  ;;  %v311_v21 = vpack.c.bf16 %v301_v20, %v301_v20  ;;  %v306_v23 = vpack.c.bf16 %v292_v15, %v291_v14  ;;  %v293_v25 = vld [vmem:[%s1263_s11 + $0x50] sm:$0xff]  ;;  %v294_v26 = vld [vmem:[%s1263_s11 + $0x58] sm:$0xff] }
  0x15   : > { %1077 = vmatprep.mubr.msk.bf16.mxu0 %vm320_vm1, %v304_v11  ;;  %v310_v19 = vpack.c.bf16 %v300_v17, %v299_v16  ;;  %v295_v27 = vld [vmem:[%s1263_s11 + $0x60] sm:$0xff]  ;;  %v296_v28 = vld [vmem:[%s1263_s11 + $0x68] sm:$0xff]  ;;  %v307_v30 = vpack.c.bf16 %v294_v26, %v293_v25  ;;  %v297_v33 = vld [vmem:[%s1263_s11 + $0x70] sm:$0xff]  ;;  %1130 = vmatpush3.bf16.msra.mxu0 %v1185_v39 }
  0x16   : > { %v308_v31 = vpack.c.bf16 %v296_v28, %v295_v27  ;;  %v298_v34 = vld [vmem:[%s1263_s11 + $0x78] sm:$0xff]  ;;  %1131 = vmatprep.subr.bf16.mxu0 %v1186_v40 }
  0x17   : > { %1089 = vmatprep.mubr.msk.bf16.mxu1 %vm320_vm1, %v310_v19  ;;  %v309_v36 = vpack.c.bf16 %v298_v34, %v297_v33 }
  0x18   : > { %1090 = vmatmul.mubr.msk.bf16.vlgmr.msra.gmra.mrb[0].mxu1 %vm320_vm1, %v311_v21 }
  0x19   : > { %1094 = vmatpush3.bf16.msra.mxu1 %v1177_v1  ;;  %1132 = vmatpush3.bf16.msra.mxu0 %v1186_v40 }
  0x1a   : > { %1095 = vmatprep.subr.bf16.mxu1 %v1178_v18  ;;  %1133 = vmatprep.subr.bf16.mxu0 %v1187_v41 }
  0x1c   : > { %1078 = vmatmul.mubr.msk.bf16.gmra.mrb[4].mxu0 %vm320_vm1, %v305_v22 }
  0x1d   : > { %1081 = vmatprep.mubr.msk.bf16.mxu0 %vm320_vm1, %v306_v23  ;;  %1096 = vmatpush3.bf16.msra.mxu1 %v1178_v18 }
  0x1e   : > { %1097 = vmatprep.subr.bf16.mxu1 %v1179_v24  ;;  %1134 = vmatpush3.bf16.msra.mxu0 %v1187_v41 }
  0x1f   : > { %1135 = vmatprep.subr.bf16.mxu0 %v1188_v42 }
  0x21   : > { %1098 = vmatpush3.bf16.msra.mxu1 %v1179_v24 }
  0x22   : > { %1099 = vmatprep.subr.bf16.mxu1 %v1180_v29  ;;  %1136 = vmatpush3.bf16.msra.mxu0 %v1188_v42 }
  0x23   : > { %1137 = vmatprep.subr.bf16.mxu0 %v1189_v43 }
  0x24   : > { %1082 = vmatmul.mubr.msk.bf16.gmra.mrb[8].mxu0 %vm320_vm1, %v307_v30 }
  0x25   : > { %1085 = vmatprep.mubr.msk.bf16.mxu0 %vm320_vm1, %v308_v31  ;;  %1100 = vmatpush3.bf16.msra.mxu1 %v1180_v29 }
  0x26   : > { %1101 = vmatprep.subr.bf16.mxu1 %v1181_v32  ;;  %1138 = vmatpush3.bf16.msra.mxu0 %v1189_v43 }
  0x27   : > { %1139 = vmatprep.subr.bf16.mxu0 %v1190_v44 }
  0x29   : > { %1102 = vmatpush3.bf16.msra.mxu1 %v1181_v32 }
  0x2a   : > { %1103 = vmatprep.subr.bf16.mxu1 %v1182_v35  ;;  %1140 = vmatpush3.bf16.msra.mxu0 %v1190_v44 }
  0x2c   : > { %1086 = vmatmul.mubr.msk.bf16.gmra.mrb[12].mxu0 %vm320_vm1, %v309_v36 }
  0x2d   : > { %1104 = vmatpush3.bf16.msra.mxu1 %v1182_v35 }
  0x2e   : > { %1105 = vmatprep.subr.bf16.mxu1 %v1183_v37 }
  0x31   : > { %1106 = vmatpush3.bf16.msra.mxu1 %v1183_v37 }
  0x32   : > { %1107 = vmatprep.subr.bf16.mxu1 %v1184_v38 }
  0x35   : > { %1108 = vmatpush3.bf16.msra.mxu1 %v1184_v38 }
  0xe7   : > { %v1075_v46 = vpop.f32.mrb[0].mxu0 }
  0xe8   : > { %v398_v47 = vadd.f32 %v1075_v46, %v1336_v45  ;;  %v389_v48 = vpop.f32.mrb[1].mxu0 }
  0xe9   : > { %v390_v49 = vadd.f32 %v1336_v45, %v389_v48  ;;  %v1076_v50 = vpop.f32.mrb[2].mxu0 }
  0xea   : > { %v401_v51 = vadd.f32 %v1076_v50, %v1336_v45  ;;  %v392_v52 = vpop.f32.mrb[3].mxu0  ;;  %v469_v54 = vmax.f32 %v398_v47, 0.0 }
  0xeb   : > { %v393_v53 = vadd.f32 %v1336_v45, %v392_v52  ;;  %v1091_v56 = vpop.f32.mrb[0].mxu1  ;;  %v467_v57 = vmax.f32 %v390_v49, 0.0  ;;  %v1192_v52 = vld [vmem:[%s1443_s5 + $0x38] sm:$0xff]  }
  0xec   : > { %v470_v55 = vmax.f32 %v401_v51, 0.0  ;;  %v453_v59 = vpop.f32.mrb[1].mxu1  ;;  %v462_v48 = vadd.f32 %v1091_v56, %v1336_v45  ;;  %v1191_v51 = vld [vmem:[%s1443_s5 + $0x30] sm:$0xff]  }
  0xed   : > { %v468_v58 = vmax.f32 %v393_v53, 0.0  ;;  %v454_v61 = vadd.f32 %v1336_v45, %v453_v59  ;;  %v1092_v62 = vpop.f32.mrb[2].mxu1  ;;  %1141 = vmatprep.subr.bf16.mxu0 %v1191_v51 }
  0xee   : > { %v487_v60 = vpack.c.bf16 %v470_v55, %v469_v54  ;;  %v456_v1 = vpop.f32.mrb[3].mxu1  ;;  %v485_v49 = vmax.f32 %v462_v48, 0.0  ;;  %1142 = vmatpush3.bf16.msra.mxu0 %v1191_v51 }
  0xef   : > { %v486_v63 = vpack.c.bf16 %v468_v58, %v467_v57  ;;  %v1079_v0 = vpop.f32.mrb[4].mxu0  ;;  %v483_v4 = vmax.f32 %v454_v61, 0.0  ;;  %v457_v5 = vadd.f32 %v1336_v45, %v456_v1  ;;  %1143 = vmatprep.subr.bf16.mxu0 %v1192_v52 }
  0xf0   : > { %v414_v2 = vadd.f32 %v1079_v0, %v1336_v45  ;;  %v405_v3 = vpop.f32.mrb[5].mxu0  ;;  %v495_v50 = vpack.c.bf16 %v485_v49, %v485_v49 }
  0xf1   : > { %v406_v6 = vadd.f32 %v1336_v45, %v405_v3  ;;  %v1080_v7 = vpop.f32.mrb[6].mxu0  ;;  %1109 = vmatprep.mubr.bf16.mxu1 %v486_v63  ;;  %v484_v10 = vmax.f32 %v457_v5, 0.0 }
  0xf2   : > { %v417_v8 = vadd.f32 %v1080_v7, %v1336_v45  ;;  %v408_v9 = vpop.f32.mrb[7].mxu0  ;;  %1110 = vmatmul.mubr.bf16.vlgmr.msra.gmra.mrb[4].mxu1 %v487_v60  ;;  %v473_v12 = vmax.f32 %v414_v2, 0.0  ;;  %1144 = vmatpush3.bf16.msra.mxu0 %v1192_v52 }
  0xf3   : > { %v409_v11 = vadd.f32 %v1336_v45, %v408_v9  ;;  %v494_v14 = vpack.c.bf16 %v484_v10, %v483_v4  ;;  %v471_v15 = vmax.f32 %v406_v6, 0.0 }
  0xf4   : > { %v474_v13 = vmax.f32 %v417_v8, 0.0 }
  0xf5   : > { %v472_v16 = vmax.f32 %v409_v11, 0.0 }
  0xf6   : > { %v489_v17 = vpack.c.bf16 %v474_v13, %v473_v12 }
  0xf7   : > { %v488_v18 = vpack.c.bf16 %v472_v16, %v471_v15  ;;  %v1083_v19 = vpop.f32.mrb[8].mxu0 }
  0xf8   : > { %v430_v20 = vadd.f32 %v1083_v19, %v1336_v45  ;;  %v421_v21 = vpop.f32.mrb[9].mxu0 }
  0xf9   : > { %v422_v22 = vadd.f32 %v1336_v45, %v421_v21  ;;  %v1084_v23 = vpop.f32.mrb[10].mxu0  ;;  %1113 = vmatprep.mubr.bf16.mxu1 %v488_v18 }
  0xfa   : > { %v433_v24 = vadd.f32 %v1084_v23, %v1336_v45  ;;  %v424_v25 = vpop.f32.mrb[11].mxu0  ;;  %1114 = vmatmul.mubr.bf16.gmra.mrb[8].mxu1 %v489_v17  ;;  %v477_v27 = vmax.f32 %v430_v20, 0.0 }
  0xfb   : > { %v425_v26 = vadd.f32 %v1336_v45, %v424_v25  ;;  %v475_v29 = vmax.f32 %v422_v22, 0.0 }
  0xfc   : > { %v478_v28 = vmax.f32 %v433_v24, 0.0 }
  0xfd   : > { %v476_v30 = vmax.f32 %v425_v26, 0.0 }
  0xfe   : > { %v491_v31 = vpack.c.bf16 %v478_v28, %v477_v27 }
  0xff   : > { %v490_v32 = vpack.c.bf16 %v476_v30, %v475_v29  ;;  %v1087_v33 = vpop.f32.mrb[12].mxu0 }
 0x100   : > { %v446_v34 = vadd.f32 %v1087_v33, %v1336_v45  ;;  %v437_v35 = vpop.f32.mrb[13].mxu0 }
 0x101   : > { %v438_v36 = vadd.f32 %v1336_v45, %v437_v35  ;;  %v1088_v37 = vpop.f32.mrb[14].mxu0  ;;  %1117 = vmatprep.mubr.bf16.mxu1 %v490_v32 }
 0x102   : > { %v449_v38 = vadd.f32 %v1088_v37, %v1336_v45  ;;  %v440_v39 = vpop.f32.mrb[15].mxu0  ;;  %1118 = vmatmul.mubr.bf16.gmra.mrb[12].mxu1 %v491_v31  ;;  %v481_v41 = vmax.f32 %v446_v34, 0.0 }
 0x103   : > { %v441_v40 = vadd.f32 %v1336_v45, %v440_v39  ;;  %v479_v43 = vmax.f32 %v438_v36, 0.0  ;;  %v1366_v45 = vld [vmem:[%s1442_s4] ss:$0 sm:$0xff] }
 0x104   : > { %v482_v42 = vmax.f32 %v449_v38, 0.0 }
 0x105   : > { %v480_v44 = vmax.f32 %v441_v40, 0.0 }
 0x106   : > { %v493_v46 = vpack.c.bf16 %v482_v42, %v481_v41 }
 0x107   : > { %v492_v47 = vpack.c.bf16 %v480_v44, %v479_v43 }
 0x109   : > { %1121 = vmatprep.mubr.bf16.mxu1 %v492_v47 }
 0x10a   : > { %1122 = vmatmul.mubr.bf16.gmra.mrb[16].mxu1 %v493_v46 }
 0x10b   : > { %1125 = vmatprep.mubr.bf16.mxu1 %v494_v14 }
 0x112   : > { %1126 = vmatmul.mubr.bf16.gmra.mrb[20].mxu1 %v495_v50 }
 0x1c5   : > { %v1111_v53 = vpop.f32.mrb[4].mxu1 }
 0x1c6   : > { %v610_v54 = vadd.f32 %v1111_v53, %v1366_v45  ;;  %v601_v55 = vpop.f32.mrb[5].mxu1 }
 0x1c7   : > { %v602_v56 = vadd.f32 %v1366_v45, %v601_v55  ;;  %v1112_v57 = vpop.f32.mrb[6].mxu1 }
 0x1c8   : > { %v613_v58 = vadd.f32 %v1112_v57, %v1366_v45  ;;  %v604_v59 = vpop.f32.mrb[7].mxu1  ;;  %v681_v61 = vmax.f32 %v610_v54, 0.0 }
 0x1c9   : > { %v605_v60 = vadd.f32 %v1366_v45, %v604_v59  ;;  %v679_v63 = vmax.f32 %v602_v56, 0.0 }
 0x1ca   : > { %v682_v62 = vmax.f32 %v613_v58, 0.0  ;;  %v1021_v58 = vld [vmem:[%s1444_s6] ss:$0 sm:$0xff] }
 0x1cb   : > { %v680_v0 = vmax.f32 %v605_v60, 0.0 }
 0x1cc   : > { %v699_v1 = vpack.c.bf16 %v682_v62, %v681_v61 }
 0x1cd   : > { %v698_v2 = vpack.c.bf16 %v680_v0, %v679_v63  ;;  %v1115_v3 = vpop.f32.mrb[8].mxu1 }
 0x1ce   : > { %v626_v4 = vadd.f32 %v1115_v3, %v1366_v45  ;;  %v617_v5 = vpop.f32.mrb[9].mxu1 }
 0x1cf   : > { %v618_v6 = vadd.f32 %v1366_v45, %v617_v5  ;;  %v1116_v7 = vpop.f32.mrb[10].mxu1  ;;  %1145 = vmatprep.mubr.bf16.mxu0 %v698_v2 }
 0x1d0   : > { %v629_v8 = vadd.f32 %v1116_v7, %v1366_v45  ;;  %v620_v9 = vpop.f32.mrb[11].mxu1  ;;  %1146 = vmatmul.mubr.bf16.vlgmr.msra.gmra.mrb[16].mxu0 %v699_v1  ;;  %v685_v11 = vmax.f32 %v626_v4, 0.0 }
 0x1d1   : > { %v621_v10 = vadd.f32 %v1366_v45, %v620_v9  ;;  %v683_v13 = vmax.f32 %v618_v6, 0.0 }
 0x1d2   : > { %v686_v12 = vmax.f32 %v629_v8, 0.0 }
 0x1d3   : > { %v684_v14 = vmax.f32 %v621_v10, 0.0 }
 0x1d4   : > { %v701_v15 = vpack.c.bf16 %v686_v12, %v685_v11 }
 0x1d5   : > { %v700_v16 = vpack.c.bf16 %v684_v14, %v683_v13  ;;  %v1119_v17 = vpop.f32.mrb[12].mxu1 }
 0x1d6   : > { %v642_v18 = vadd.f32 %v1119_v17, %v1366_v45  ;;  %v633_v19 = vpop.f32.mrb[13].mxu1 }
 0x1d7   : > { %v634_v20 = vadd.f32 %v1366_v45, %v633_v19  ;;  %v1120_v21 = vpop.f32.mrb[14].mxu1  ;;  %1149 = vmatprep.mubr.bf16.mxu0 %v700_v16 }
 0x1d8   : > { %v645_v22 = vadd.f32 %v1120_v21, %v1366_v45  ;;  %v636_v23 = vpop.f32.mrb[15].mxu1  ;;  %1150 = vmatmul.mubr.bf16.gmra.mrb[20].mxu0 %v701_v15  ;;  %v689_v25 = vmax.f32 %v642_v18, 0.0 }
 0x1d9   : > { %v637_v24 = vadd.f32 %v1366_v45, %v636_v23  ;;  %v687_v27 = vmax.f32 %v634_v20, 0.0 }
 0x1da   : > { %v690_v26 = vmax.f32 %v645_v22, 0.0 }
 0x1db   : > { %v688_v28 = vmax.f32 %v637_v24, 0.0 }
 0x1dc   : > { %v703_v29 = vpack.c.bf16 %v690_v26, %v689_v25 }
 0x1dd   : > { %v702_v30 = vpack.c.bf16 %v688_v28, %v687_v27  ;;  %v1123_v31 = vpop.f32.mrb[16].mxu1 }
 0x1de   : > { %v658_v32 = vadd.f32 %v1123_v31, %v1366_v45  ;;  %v649_v33 = vpop.f32.mrb[17].mxu1 }
 0x1df   : > { %v650_v34 = vadd.f32 %v1366_v45, %v649_v33  ;;  %v1124_v35 = vpop.f32.mrb[18].mxu1  ;;  %1153 = vmatprep.mubr.bf16.mxu0 %v702_v30 }
 0x1e0   : > { %v661_v36 = vadd.f32 %v1124_v35, %v1366_v45  ;;  %v652_v37 = vpop.f32.mrb[19].mxu1  ;;  %1154 = vmatmul.mubr.bf16.gmra.mrb[24].mxu0 %v703_v29  ;;  %v693_v39 = vmax.f32 %v658_v32, 0.0 }
 0x1e1   : > { %v653_v38 = vadd.f32 %v1366_v45, %v652_v37  ;;  %v691_v41 = vmax.f32 %v650_v34, 0.0 }
 0x1e2   : > { %v694_v40 = vmax.f32 %v661_v36, 0.0 }
 0x1e3   : > { %v692_v42 = vmax.f32 %v653_v38, 0.0 }
 0x1e4   : > { %v705_v43 = vpack.c.bf16 %v694_v40, %v693_v39 }
 0x1e5   : > { %v704_v44 = vpack.c.bf16 %v692_v42, %v691_v41  ;;  %v1127_v46 = vpop.f32.mrb[20].mxu1 }
 0x1e6   : > { %v674_v47 = vadd.f32 %v1127_v46, %v1366_v45  ;;  %v665_v48 = vpop.f32.mrb[21].mxu1 }
 0x1e7   : > { %v666_v49 = vadd.f32 %v1366_v45, %v665_v48  ;;  %v1128_v50 = vpop.f32.mrb[22].mxu1  ;;  %1157 = vmatprep.mubr.bf16.mxu0 %v704_v44 }
 0x1e8   : > { %v668_v51 = vpop.f32.mrb[23].mxu1  ;;  %1158 = vmatmul.mubr.bf16.gmra.mrb[28].mxu0 %v705_v43  ;;  %v697_v53 = vmax.f32 %v674_v47, 0.0 }
 0x1e9   : > { %v669_v52 = vadd.f32 %v1366_v45, %v668_v51  ;;  %v695_v54 = vmax.f32 %v666_v49, 0.0 }
 0x1ea   : > { %v707_v57 = vpack.c.bf16 %v697_v53, %v697_v53 }
 0x1eb   : > { %v696_v55 = vmax.f32 %v669_v52, 0.0 }
 0x1ed   : > { %v706_v56 = vpack.c.bf16 %v696_v55, %v695_v54 }
 0x1ef   : > { %1161 = vmatprep.mubr.bf16.mxu0 %v706_v56 }
 0x1f0   : > { %1162 = vmatmul.mubr.bf16.gmra.mrb[32].mxu0 %v707_v57 }
 0x2a3   : > { %v1147_v45 = vpop.f32.mrb[16].mxu0 }
 0x2a4   : > { %v893_v59 = vadd.f32 %v1147_v45, %v1021_v58  ;;  %v806_v60 = vpop.f32.mrb[17].mxu0 }
 0x2a5   : > { %v891_v61 = vadd.f32 %v1021_v58, %v806_v60  ;;  %v1148_v62 = vpop.f32.mrb[18].mxu0 }
 0x2a6   : > { %913 = vst.msk [vmem:[%s1395_s10 + $0x10] sm:$0xff] %vm910_vm2, %v893_v59  ;;  %v894_v63 = vadd.f32 %v1148_v62, %v1021_v58  ;;  %v809_v0 = vpop.f32.mrb[19].mxu0 }
 0x2a7   : > { %911 = vst.msk [vmem:[%s1395_s10] sm:$0xff] %vm910_vm2, %v891_v61  ;;  %v892_v1 = vadd.f32 %v1021_v58, %v809_v0 }
 0x2a8   : > { %914 = vst.msk [vmem:[%s1395_s10 + $0x18] sm:$0xff] %vm910_vm2, %v894_v63 }
 0x2a9   : > { %912 = vst.msk [vmem:[%s1395_s10 + $0x8] sm:$0xff] %vm910_vm2, %v892_v1 }
 0x2ab   : > { %v1151_v2 = vpop.f32.mrb[20].mxu0 }
 0x2ac   : > { %v897_v3 = vadd.f32 %v1151_v2, %v1021_v58  ;;  %v822_v4 = vpop.f32.mrb[21].mxu0 }
 0x2ad   : > { %v895_v5 = vadd.f32 %v1021_v58, %v822_v4  ;;  %v1152_v6 = vpop.f32.mrb[22].mxu0 }
 0x2ae   : > { %917 = vst.msk [vmem:[%s1395_s10 + $0x30] sm:$0xff] %vm910_vm2, %v897_v3  ;;  %v898_v7 = vadd.f32 %v1152_v6, %v1021_v58  ;;  %v825_v8 = vpop.f32.mrb[23].mxu0 }
 0x2af   : > { %915 = vst.msk [vmem:[%s1395_s10 + $0x20] sm:$0xff] %vm910_vm2, %v895_v5  ;;  %v896_v9 = vadd.f32 %v1021_v58, %v825_v8 }
 0x2b0   : > { %918 = vst.msk [vmem:[%s1395_s10 + $0x38] sm:$0xff] %vm910_vm2, %v898_v7 }
 0x2b1   : > { %916 = vst.msk [vmem:[%s1395_s10 + $0x28] sm:$0xff] %vm910_vm2, %v896_v9 }
 0x2b3   : > { %v1155_v10 = vpop.f32.mrb[24].mxu0 }
 0x2b4   : > { %v901_v11 = vadd.f32 %v1155_v10, %v1021_v58  ;;  %v838_v12 = vpop.f32.mrb[25].mxu0 }
 0x2b5   : > { %v899_v13 = vadd.f32 %v1021_v58, %v838_v12  ;;  %v1156_v14 = vpop.f32.mrb[26].mxu0 }
 0x2b6   : > { %921 = vst.msk [vmem:[%s1395_s10 + $0x50] sm:$0xff] %vm910_vm2, %v901_v11  ;;  %v902_v15 = vadd.f32 %v1156_v14, %v1021_v58  ;;  %v841_v16 = vpop.f32.mrb[27].mxu0 }
 0x2b7   : > { %919 = vst.msk [vmem:[%s1395_s10 + $0x40] sm:$0xff] %vm910_vm2, %v899_v13  ;;  %v900_v17 = vadd.f32 %v1021_v58, %v841_v16 }
 0x2b8   : > { %922 = vst.msk [vmem:[%s1395_s10 + $0x58] sm:$0xff] %vm910_vm2, %v902_v15 }
 0x2b9   : > { %920 = vst.msk [vmem:[%s1395_s10 + $0x48] sm:$0xff] %vm910_vm2, %v900_v17 }
 0x2bb   : > { %v1159_v18 = vpop.f32.mrb[28].mxu0 }
 0x2bc   : > { %v905_v19 = vadd.f32 %v1159_v18, %v1021_v58  ;;  %v854_v20 = vpop.f32.mrb[29].mxu0 }
 0x2bd   : > { %v903_v21 = vadd.f32 %v1021_v58, %v854_v20  ;;  %v1160_v22 = vpop.f32.mrb[30].mxu0 }
 0x2be   : > { %925 = vst.msk [vmem:[%s1395_s10 + $0x70] sm:$0xff] %vm910_vm2, %v905_v19  ;;  %v906_v23 = vadd.f32 %v1160_v22, %v1021_v58  ;;  %v857_v24 = vpop.f32.mrb[31].mxu0 }
 0x2bf   : > { %923 = vst.msk [vmem:[%s1395_s10 + $0x60] sm:$0xff] %vm910_vm2, %v903_v21  ;;  %v904_v25 = vadd.f32 %v1021_v58, %v857_v24 }
 0x2c0   : > { %926 = vst.msk [vmem:[%s1395_s10 + $0x78] sm:$0xff] %vm910_vm2, %v906_v23 }
 0x2c1   : > { %924 = vst.msk [vmem:[%s1395_s10 + $0x68] sm:$0xff] %vm910_vm2, %v904_v25 }
 0x2c3   : > { %v1163_v26 = vpop.f32.mrb[32].mxu0 }
 0x2c4   : > { %v909_v27 = vadd.f32 %v1163_v26, %v1021_v58  ;;  %v870_v28 = vpop.f32.mrb[33].mxu0 }
 0x2c5   : > { %v907_v29 = vadd.f32 %v1021_v58, %v870_v28  ;;  %v1164_v30 = vpop.f32.mrb[34].mxu0 }
 0x2c6   : > { %929 = vst.msk [vmem:[%s1395_s10 + $0x90] sm:$0xff] %vm910_vm2, %v909_v27  ;;  %v873_v31 = vpop.f32.mrb[35].mxu0 }
 0x2c7   : > { %927 = vst.msk [vmem:[%s1395_s10 + $0x80] sm:$0xff] %vm910_vm2, %v907_v29  ;;  %v908_v32 = vadd.f32 %v1021_v58, %v873_v31 }
 0x2c9   : > { %928 = vst.msk [vmem:[%s1395_s10 + $0x88] sm:$0xff] %vm910_vm2, %v908_v32 }
 0x2ca PF: > { %s17_s24 = sadd.s32 1, %s1199_s24  }
 0x2cb   : > { %p14_p4 = scmp.ge.s32.totalorder %s17_s24, 4  }
 0x2cd   :  { %16 = sbr.rel (!%p14_p4) target bundleno = 1 (0x1), region = 78 }

</bundles_post_ra>
